<compile_context>
chip_gen: v7x
topology: tpu7x:2x2x1
jax: 0.10.0
libtpu: 0.0.40
codegen_flags: <defaults>
</compile_context>

<pallas_src>
import math

import jax
import jax.numpy as jnp
from jax.experimental import pallas as pl
from jax.experimental.pallas import tpu as pltpu

_LANES = 128
_TARGET_BLOCK_BYTES = 2 * 1024 * 1024   # ~2 MiB blocks: ~85%+ of HBM roofline, VMEM-safe
_MIN_GRID_STEPS = 4                     # pipeline overlap + work for both v7x TensorCores
_VMEM_LIMIT = 32 * 1024 * 1024          # explicit: v5e default scoped VMEM is only 16 MiB


# ---------------------------------------------------------------------------
# shared elementwise body (exact PyTorch softshrink semantics)
# ---------------------------------------------------------------------------
def _shrink(x, t):
    zero = jnp.zeros((), x.dtype)
    return jnp.where(x > t, x - t, jnp.where(x < -t, x + t, zero))


def _softshrink_jnp(x, t):
    return _shrink(x, jnp.asarray(t, x.dtype))


# ---------------------------------------------------------------------------
# Pallas kernels
# ---------------------------------------------------------------------------
def _softshrink_scalar_kernel(t_sref, x_ref, o_ref):
    # t_sref: (1,) float32 scalar-prefetch threshold in SMEM (no HBM stream)
    x = x_ref[...]
    t = t_sref[0].astype(x.dtype)            # in-kernel cast: one scalar op, free
    o_ref[...] = _shrink(x, t)


def _softshrink_row_kernel(x_ref, t_ref, o_ref):
    # x_ref/o_ref: (tr, tc) VMEM; t_ref: (tr, 1) VMEM, broadcasts across columns
    x = x_ref[...]
    o_ref[...] = _shrink(x, t_ref[...])


def _softshrink_stream_kernel(x_ref, t_ref, o_ref):
    # general-broadcast fallback: threshold streamed alongside x
    x = x_ref[...]
    o_ref[...] = _shrink(x, t_ref[...])


# ---------------------------------------------------------------------------
# tiling heuristics
# ---------------------------------------------------------------------------
def _pick_tile_rows(rows, cols, itemsize):
    if rows <= 8:
        return rows                           # full extent (always legal)
    # cap block size at ~2 MiB, row tile a multiple of 8
    max_rows = max(8, (_TARGET_BLOCK_BYTES // max(1, cols * itemsize)) // 8 * 8)
    # aim for >= _MIN_GRID_STEPS grid steps so prefetch/compute/writeback overlap and
    # v7x's second TensorCore gets blocks under dimension_semantics=("parallel",)
    want = -(-rows // _MIN_GRID_STEPS)
    return min(max_rows, max(8, ((want + 7) // 8) * 8))


def _pick_tile_cols(cols, itemsize):
    if cols % _LANES != 0:
        return cols                           # full extent is always legal
    max_cols = max(_LANES, (_TARGET_BLOCK_BYTES // (8 * itemsize)) // _LANES * _LANES)
    return min(cols, max_cols)


# ---------------------------------------------------------------------------
# pallas_call wrappers
# ---------------------------------------------------------------------------
def _scalar_call(x2d, t_f32):
    """Scalar threshold (SMEM via scalar prefetch) on a lane-dense (rows, 128) view."""
    rows, cols = x2d.shape
    tr = _pick_tile_rows(rows, cols, x2d.dtype.itemsize)
    blk = pl.BlockSpec((tr, cols), lambda i, t_ref: (i, 0))
    return pl.pallas_call(
        _softshrink_scalar_kernel,
        out_shape=jax.ShapeDtypeStruct(x2d.shape, x2d.dtype),
        grid_spec=pltpu.PrefetchScalarGridSpec(
            num_scalar_prefetch=1,
            grid=(pl.cdiv(rows, tr),),
            in_specs=[blk],
            out_specs=blk),
        compiler_params=pltpu.CompilerParams(
            dimension_semantics=("parallel",),
            vmem_limit_bytes=_VMEM_LIMIT),
    )(t_f32, x2d)


def _row_call(x2d, t2d):
    """Per-row threshold: x (R, C), threshold (R, 1) -> only 2 full HBM streams."""
    rows, cols = x2d.shape
    itemsize = x2d.dtype.itemsize
    tc = _pick_tile_cols(cols, itemsize)
    tr = _pick_tile_rows(rows, tc, itemsize)
    x_blk = pl.BlockSpec((tr, tc), lambda i, j: (i, j))
    t_blk = pl.BlockSpec((tr, 1), lambda i, j: (i, 0))
    return pl.pallas_call(
        _softshrink_row_kernel,
        out_shape=jax.ShapeDtypeStruct(x2d.shape, x2d.dtype),
        grid=(pl.cdiv(rows, tr), pl.cdiv(cols, tc)),
        in_specs=[x_blk, t_blk],
        out_specs=x_blk,
        compiler_params=pltpu.CompilerParams(
            dimension_semantics=("parallel", "parallel"),
            vmem_limit_bytes=_VMEM_LIMIT),
    )(x2d, t2d)


def _stream_call(x2d, t2d):
    """General broadcast fallback: threshold streamed at full size alongside x."""
    rows, cols = x2d.shape
    tr = _pick_tile_rows(rows, cols, x2d.dtype.itemsize)
    blk = pl.BlockSpec((tr, cols), lambda i: (i, 0))
    return pl.pallas_call(
        _softshrink_stream_kernel,
        out_shape=jax.ShapeDtypeStruct(x2d.shape, x2d.dtype),
        grid=(pl.cdiv(rows, tr),),
        in_specs=[blk, blk],
        out_specs=blk,
        compiler_params=pltpu.CompilerParams(
            dimension_semantics=("parallel",),
            vmem_limit_bytes=_VMEM_LIMIT),
    )(x2d, t2d)


# ---------------------------------------------------------------------------
# layout glue (JAX wrappers)
# ---------------------------------------------------------------------------
def _scalar_path(x, t_f32):
    n = x.size
    flat = x.reshape(-1)
    bulk = (n // _LANES) * _LANES
    if bulk == n:
        return _scalar_call(flat.reshape(-1, _LANES), t_f32).reshape(x.shape)
    tt = t_f32[0].astype(x.dtype)
    if bulk:
        # kernel on the 128-aligned bulk; < 128-element remainder as a tiny jnp expr
        yb = _scalar_call(flat[:bulk].reshape(-1, _LANES), t_f32).reshape(-1)
        yt = _shrink(flat[bulk:], tt)
        return jnp.concatenate([yb, yt]).reshape(x.shape)
    return _shrink(x, tt)                    # fewer than 128 elements total


def _stream_path(x, tf):
    n = x.size
    xf = x.reshape(-1)
    tfl = tf.reshape(-1)
    bulk = (n // _LANES) * _LANES
    if bulk == n:
        return _stream_call(xf.reshape(-1, _LANES),
                            tfl.reshape(-1, _LANES)).reshape(x.shape)
    if bulk:
        yb = _stream_call(xf[:bulk].reshape(-1, _LANES),
                          tfl[:bulk].reshape(-1, _LANES)).reshape(-1)
        yt = _shrink(xf[bulk:], tfl[bulk:])
        return jnp.concatenate([yb, yt]).reshape(x.shape)
    return _shrink(xf, tfl).reshape(x.shape)


def _apply_softshrink_real(x, threshold):
    """Elementwise softshrink on a real array with a broadcastable threshold."""
    dtype = x.dtype
    t = jnp.asarray(threshold)

    if t.size == 1:
        # scalar threshold: SMEM (scalar prefetch), kept at f32, no threshold HBM stream
        return _scalar_path(x, jnp.asarray(t, jnp.float32).reshape(1))

    # tensor threshold: right-align to x.ndim (numpy/torch broadcasting)
    tshape = (1,) * (x.ndim - t.ndim) + t.shape
    t = t.reshape(tshape).astype(dtype)

    ok = all(ts in (1, xs) for ts, xs in zip(tshape, x.shape))
    k = max((i for i, ts in enumerate(tshape) if ts > 1), default=-1)
    if ok and k >= 0:
        lead, tail = x.shape[:k + 1], x.shape[k + 1:]
        rows = math.prod(lead)
        cols = math.prod(tail)               # math.prod(()) == 1
        lane_ok = (cols % _LANES == 0) or (cols * 8 * dtype.itemsize <= _TARGET_BLOCK_BYTES)
        if cols >= _LANES and lane_ok:
            # per-row threshold: compact (rows, 1) threshold block instead of a
            # full-size broadcast stream -> 2 HBM streams instead of 3 (~1.5x)
            t_rows = jnp.broadcast_to(t, lead + (1,) * len(tail)).reshape(rows, 1)
            return _row_call(x.reshape(rows, cols), t_rows).reshape(x.shape)

    # exotic broadcast (e.g. threshold varies along the last axis): stream it
    # TODO(synk): this fallback moves 3 full tensors through HBM (x, t, y)
    tf = jnp.broadcast_to(t, x.shape)
    return _stream_path(x, tf)


def soft_shrink_act(x, threshold):
    """JAX/Pallas equivalent of SoftShrinkAct.forward(x, threshold)."""
    if jnp.iscomplexobj(x):
        # torch.view_as_real + threshold.unsqueeze(-1) == apply the same (broadcast)
        # threshold independently to real and imag parts.
        xr = jnp.stack([jnp.real(x), jnp.imag(x)], axis=0)      # (2, ...) real
        yr = _apply_softshrink_real(xr, jnp.asarray(threshold))
        return jax.lax.complex(yr[0], yr[1]).astype(x.dtype)    # view_as_complex
    return _apply_softshrink_real(x, jnp.asarray(threshold))


# ---------------------------------------------------------------------------
# Pure-JAX reference (matches the PyTorch module)
# ---------------------------------------------------------------------------
def _ref_softshrink_real(x, t):
    t = jnp.broadcast_to(jnp.asarray(t, x.dtype), x.shape)
    return jnp.where(x > t, x - t, jnp.where(x < -t, x + t, jnp.zeros_like(x)))


def _ref(x, threshold):
    if jnp.iscomplexobj(x):
        xr = jnp.stack([jnp.real(x), jnp.imag(x)], axis=-1)
        t = jnp.asarray(threshold, dtype=xr.dtype)[..., None]
        yr = _ref_softshrink_real(xr, t)
        return jax.lax.complex(yr[..., 0], yr[..., 1]).astype(x.dtype)
    return _ref_softshrink_real(x, threshold)


if __name__ == "__main__":
    key = jax.random.PRNGKey(0)
    k1, k2, k3, k4, k5 = jax.random.split(key, 5)

    # ---- real path: per-channel threshold -> compact (R,1) row-threshold kernel ----
    x_real = jax.random.normal(k1, (2, 4, 16, 16), dtype=jnp.float32)
    thr_real = jnp.full((2, 4, 1, 1), 0.3, dtype=jnp.float32)
    y_real = jax.block_until_ready(soft_shrink_act(x_real, thr_real))
    assert y_real.shape == x_real.shape and y_real.dtype == x_real.dtype
    assert jnp.allclose(y_real, _ref(x_real, thr_real), atol=1e-6)

    # ---- complex path: complex64 input, scalar threshold (SMEM scalar-prefetch) ----
    xc = (jax.random.normal(k2, (2, 4, 16, 16), dtype=jnp.float32)
          + 1j * jax.random.normal(k3, (2, 4, 16, 16), dtype=jnp.float32)
          ).astype(jnp.complex64)
    thr_c = jnp.asarray(0.5, dtype=jnp.float32)
    y_c = jax.block_until_ready(soft_shrink_act(xc, thr_c))
    assert y_c.shape == xc.shape and y_c.dtype == xc.dtype
    assert jnp.allclose(y_c, _ref(xc, thr_c), atol=1e-6)

    # ---- real path: scalar threshold + ragged size (128-aligned bulk + jnp tail) ----
    x_rag = jax.random.normal(k4, (3, 50), dtype=jnp.float32)   # 150 elements
    y_rag = jax.block_until_ready(soft_shrink_act(x_rag, jnp.asarray(0.25, jnp.float32)))
    assert y_rag.shape == x_rag.shape
    assert jnp.allclose(y_rag, _ref(x_rag, jnp.asarray(0.25, jnp.float32)), atol=1e-6)

    # ---- real path: threshold varying along the last axis -> streamed fallback ----
    x_s = jax.random.normal(k5, (4, 16, 16), dtype=jnp.float32)
    thr_s = jnp.linspace(0.1, 0.6, 16, dtype=jnp.float32)
    y_s = jax.block_until_ready(soft_shrink_act(x_s, thr_s))
    assert y_s.shape == x_s.shape
    assert jnp.allclose(y_s, _ref(x_s, thr_s), atol=1e-6)

    print("KERNEL_OK")
</pallas_src>

<mosaic_0001>
module attributes {stable_mosaic.version = 11 : i64} {
  func.func @_softshrink_row_kernel(%arg0: i32, %arg1: i32, %arg2: memref<8x256xf32, #tpu.memory_space<vmem>>, %arg3: memref<8x1xf32, #tpu.memory_space<vmem>>, %arg4: memref<8x256xf32, #tpu.memory_space<vmem>>) attributes {dimension_semantics = [#tpu.dimension_semantics<parallel>, #tpu.dimension_semantics<parallel>], iteration_bounds = array<i64: 1, 1>, scalar_prefetch = 0 : i64, scratch_operands = 0 : i64, tpu.core_type = #tpu.core_type<tc>, window_params = [{transform_indices = @transform_0, window_bounds = array<i64: 8, 256>}, {transform_indices = @transform_1, window_bounds = array<i64: 8, 1>}, {transform_indices = @transform_2, window_bounds = array<i64: 8, 256>}]} {
    %c0 = arith.constant 0 : index
    %c0_0 = arith.constant 0 : index
    %0 = vector.load %arg2[%c0, %c0_0] : memref<8x256xf32, #tpu.memory_space<vmem>>, vector<8x256xf32>
    %c0_1 = arith.constant 0 : index
    %c0_2 = arith.constant 0 : index
    %1 = vector.load %arg3[%c0_1, %c0_2] : memref<8x1xf32, #tpu.memory_space<vmem>>, vector<8x1xf32>
    %2 = vector.broadcast %1 : vector<8x1xf32> to vector<8x256xf32>
    %3 = arith.cmpf ogt, %0, %2 : vector<8x256xf32>
    %4 = vector.broadcast %1 : vector<8x1xf32> to vector<8x256xf32>
    %5 = arith.subf %0, %4 : vector<8x256xf32>
    %cst = arith.constant 0.000000e+00 : f32
    %6 = vector.broadcast %cst : f32 to vector<8x1xf32>
    %7 = arith.subf %6, %1 : vector<8x1xf32>
    %8 = vector.broadcast %7 : vector<8x1xf32> to vector<8x256xf32>
    %9 = arith.cmpf olt, %0, %8 : vector<8x256xf32>
    %10 = vector.broadcast %1 : vector<8x1xf32> to vector<8x256xf32>
    %11 = arith.addf %0, %10 : vector<8x256xf32>
    %cst_3 = arith.constant 0.000000e+00 : f32
    %12 = vector.broadcast %cst_3 : f32 to vector<8x256xf32>
    %13 = arith.select %9, %11, %12 : vector<8x256xi1>, vector<8x256xf32>
    %14 = arith.select %3, %5, %13 : vector<8x256xi1>, vector<8x256xf32>
    %c0_4 = arith.constant 0 : index
    %c0_5 = arith.constant 0 : index
    %15 = vector.load %arg4[%c0_4, %c0_5] : memref<8x256xf32, #tpu.memory_space<vmem>>, vector<8x256xf32>
    tpu.vector_store %arg4[%c0_4, %c0_5], %14 {strides = array<i32>} : memref<8x256xf32, #tpu.memory_space<vmem>>, vector<8x256xf32>,
    return
  }
  func.func @transform_0(%arg0: i32, %arg1: i32) -> (i32, i32) {
    %c0_i32 = arith.constant 0 : i32
    return %arg0, %arg1 : i32, i32
  }
  func.func @transform_1(%arg0: i32, %arg1: i32) -> (i32, i32) {
    %c0_i32 = arith.constant 0 : i32
    %c0_i32_0 = arith.constant 0 : i32
    return %arg0, %c0_i32 : i32, i32
  }
  func.func @transform_2(%arg0: i32, %arg1: i32) -> (i32, i32) {
    %c0_i32 = arith.constant 0 : i32
    return %arg0, %arg1 : i32, i32
  }
}

</mosaic_0001>

<bundles_post_ra>
// kernel: tpu_custom_call.1
= control target key start
LH: loop header
LB: loop body
LE: loop exit
PB: predicated region body
PF: predicated region fallthrough
CT: control target
= control target key end

     0   :  { %7 = vsyncpa [#allocation3], 0  ;;  %s164_s0 = inlined_call_operand.hbm [shape: f32[8,256], index: 0, kind: input, shape index: {}]   ;;  %s165_s1 = inlined_call_operand.vmem [shape: f32[8,1], index: 1, kind: input, shape index: {}]   ;;  %s166_s2 = inlined_call_operand.hbm [shape: f32[8,256], index: 2, kind: output, shape index: {}]  }
   0x1   :  { %8 = vsyncpa [#allocation4], 0  ;;  %s119_s9 = smov [#allocation2]   ;;  %s71_s13 = scalar_lea.hbm %s164_s0, 256 }
   0x2   :  { %s15_s10 = sshll.u32 %s119_s9, 4  ;;  %p72_p0 = scmp.ne.s32.totalorder %s164_s0, %s71_s13  ;;  %s16_s10 = int_to_ptr.vmem [resolvable:$true] %s15_s10 }
   0x3   :  { %p75_p1 = scmp.lt.u32.totalorder %s71_s13, %s164_s0 }
   0x5   :  { %p77_p2 = pnand %p75_p1, %p72_p0 }
   0x7   :  { %80 = shalt.err (!%p77_p2)
}
   0x8   :  { %s81_s18 = scalar_lea.vmem %s16_s10, 256  ;;  %p86_p4 = scmp.lt.s32.totalorder %s16_s10, %s16_s10 }
   0x9   :  { %p82_p3 = scmp.ne.s32.totalorder %s16_s10, %s81_s18  ;;  %p87_p5 = scmp.lt.s32.totalorder %s81_s18, %s81_s18 }
   0xb   :  { %p88_p6 = por %p87_p5, %p86_p4 }
   0xd   :  { %p89_p7 = pnand %p88_p6, %p82_p3 }
   0xf   :  { %92 = shalt.err (!%p89_p7)
}
  0x10   :  { %18 = dma.hbm_to_vmem [thread:$0]  %s164_s0, 256, %s16_s10, [#allocation3]  }
  0x11   :  { %115 = dma.done.wait [#allocation3], 256  }
  0x12   :  { %116 = vsyncadd [#allocation3], 4294967040  ;;  %v120_v0 = vmov 0   ;;  %v26_v1 = vld [vmem:[%s165_s1] sm:$0xff]  ;;  %v25_v5 = vld [vmem:[#allocation2 + $0x8] sm:$0xff]  ;;  %s121_s23 = smov [#allocation5]  }
  0x13   :  { %70 = vset.pattern.permute.xlu0 %v120_v0  ;;  %v36_v2 = vsub.f32 0.0, %v26_v1  ;;  %v24_v4 = vld [vmem:[#allocation2] sm:$0xff]  ;;  %s58_s24 = sshll.u32 %s121_s23, 4  ;;  %s59_s24 = int_to_ptr.vmem [resolvable:$true] %s58_s24 }
  0x14   :  { %29 = vperm.xlu0 %70, %v26_v1   ;;  %s93_s0 = scalar_lea.vmem %s59_s24, 256  ;;  %p98_p9 = scmp.lt.s32.totalorder %s59_s24, %s59_s24 }
  0x15   :  { %p94_p8 = scmp.ne.s32.totalorder %s59_s24, %s93_s0  ;;  %p99_p10 = scmp.lt.s32.totalorder %s93_s0, %s93_s0 }
  0x17   :  { %p100_p11 = por %p99_p10, %p98_p9 }
  0x18   :  { %39 = vperm.xlu0 %70, %v36_v2  }
  0x19   :  { %p101_p12 = pnand %p100_p11, %p94_p8 }
  0x93   :  { %v30_v3 = vpop.permute.xlu0 %29 }
  0x94   :  { %v44_v7 = vadd.f32 %v30_v3, %v24_v4  ;;  %v45_v8 = vadd.f32 %v30_v3, %v25_v5  ;;  %v34_v9 = vsub.f32 %v24_v4, %v30_v3  ;;  %v35_v10 = vsub.f32 %v25_v5, %v30_v3 }
  0x95   :  { %vm32_vm2 = vcmp.gt.f32.partialorder %v24_v4, %v30_v3  ;;  %vm33_vm3 = vcmp.gt.f32.partialorder %v25_v5, %v30_v3 }
  0x97   :  { %v40_v6 = vpop.permute.xlu0 %39 }
  0x98   :  { %vm42_vm0 = vcmp.lt.f32.partialorder %v24_v4, %v40_v6  ;;  %vm43_vm1 = vcmp.lt.f32.partialorder %v25_v5, %v40_v6 }
  0x99   :  { %v46_v11 = vsel %vm42_vm0, %v44_v7, 0.0  ;;  %v47_v12 = vsel %vm43_vm1, %v45_v8, 0.0 }
  0x9a   :  { %v48_v13 = vsel %vm32_vm2, %v34_v9, %v46_v11  ;;  %v49_v14 = vsel %vm33_vm3, %v35_v10, %v47_v12 }
  0x9b   :  { %50 = vst [vmem:[#allocation5] sm:$0xff] %v48_v13  ;;  %51 = vst [vmem:[#allocation5 + $0x8] sm:$0xff] %v49_v14 }
  0x9c   :  { %104 = shalt.err (!%p101_p12)
}
  0x9d   :  { %s105_s26 = scalar_lea.hbm %s166_s2, 256 }
  0x9e   :  { %p106_p13 = scmp.ne.s32.totalorder %s166_s2, %s105_s26  ;;  %p109_p0 = scmp.lt.u32.totalorder %s105_s26, %s166_s2 }
  0xa0   :  { %p111_p1 = pnand %p109_p0, %p106_p13 }
  0xa2   :  { %114 = shalt.err (!%p111_p1)
}
  0xa3   :  { %61 = dma.vmem_to_hbm [thread:$0]  %s59_s24, 256, %s166_s2, [#allocation4]  }
  0xa4   :  { %117 = dma.done.wait [#allocation4], 256  }
  0xa5   :  { %118 = vsyncadd [#allocation4], 4294967040 }
  0xa6   :  { %65 = vsyncpa [#allocation3], 1 }
  0xa7   :  { %66 = vsyncpa [#allocation4], 1 }

</bundles_post_ra>
